<compile_context>
chip_gen: v7x
topology: tpu7x:2x2x1
jax: 0.10.0
libtpu: 0.0.40
codegen_flags: <defaults>
</compile_context>

<pallas_src>
import jax
import jax.numpy as jnp
from jax.experimental import pallas as pl
from jax.experimental.pallas import tpu as pltpu


def _make_aug_kernel(C: int, crop: int):
    def kernel(x_ref, wy_ref, wxT_ref, mean_ref, istd_ref, o_ref):
        # x_ref   : (1, C, H, W)       native-dtype image block
        # wy_ref  : (1, crop, H)       bf16 row-interpolation matrix (v-flip folded in)
        # wxT_ref : (1, W, crop)       bf16 column-interpolation matrix, pre-transposed
        # mean_ref, istd_ref: (C*crop, 1) f32 per-output-row normalization constants
        # o_ref   : (1, C*crop, crop)  f32
        wy = wy_ref[0]                      # (crop, H)  bf16
        wxT = wxT_ref[0]                    # (W, crop)  bf16
        # First matmul per channel (cast the image tile to bf16 here, not in HBM),
        # stacked along the sublane axis -> (C*crop, W) f32.
        tmp = jnp.concatenate(
            [jnp.dot(wy, x_ref[0, c].astype(jnp.bfloat16),
                     preferred_element_type=jnp.float32)
             for c in range(C)],
            axis=0,
        )
        # Second matmul once, stacked: (C*crop, W) @ (W, crop) -> (C*crop, crop).
        out = jnp.dot(tmp.astype(jnp.bfloat16), wxT,
                      preferred_element_type=jnp.float32)
        # Fused per-channel normalization in f32.
        o_ref[0] = ((out - mean_ref[...]) * istd_ref[...]).astype(o_ref.dtype)
        # NOTE: for tiny crop sizes (e.g. 8) the store is lane-masked; a lane-dense
        # (C, crop*crop) store would require an in-kernel cross-lane reshape whose
        # relayout cost outweighs the ~1 KiB/step of output traffic at this size,
        # and for realistic crop sizes (>=128) the store is already lane-dense.
    return kernel


def _interp_matrices(start, length, in_size, flip, crop_size):
    """Per-sample (B, crop_size, in_size) bilinear interpolation matrices
    (align_corners=True mapping), with optional flip folded in.  Built in f32;
    the caller casts only the *final* matrices to bf16."""
    i = jnp.arange(crop_size, dtype=jnp.float32)
    denom = float(max(crop_size - 1, 1))            # guard crop_size == 1
    pos = start[:, None] + i[None, :] * (length[:, None] - 1.0) / denom
    lo = jnp.clip(jnp.floor(pos), 0.0, float(in_size - 1))
    hi = jnp.clip(lo + 1.0, 0.0, float(in_size - 1))
    frac = pos - lo
    src = jnp.arange(in_size, dtype=jnp.float32)
    W = ((src[None, None, :] == lo[:, :, None]).astype(jnp.float32) * (1.0 - frac[:, :, None])
         + (src[None, None, :] == hi[:, :, None]).astype(jnp.float32) * frac[:, :, None])
    W = jnp.where(flip[:, None, None], W[:, ::-1, :], W)
    return W


def linear_data_augmentation(x, mean, std, key, crop_size):
    """RandomResizedCrop -> RandomHorizontalFlip -> RandomVerticalFlip -> Normalize."""
    B, C, H, W = x.shape
    k1, k2, k3, k4, k5, k6 = jax.random.split(key, 6)

    # --- RandomResizedCrop parameter sampling (scale=(0.08, 1.0), ratio=(3/4, 4/3)) ---
    # TODO(synk): Kornia uses 10-try rejection sampling with center-crop fallback;
    # simplified here to a clipped one-shot sample, so the crop-parameter
    # distribution does not exactly match Kornia/torchvision.
    area = jax.random.uniform(k1, (B,), minval=0.08, maxval=1.0)
    log_ratio = jax.random.uniform(k2, (B,), minval=jnp.log(3.0 / 4.0),
                                   maxval=jnp.log(4.0 / 3.0))
    ratio = jnp.exp(log_ratio)
    cw = jnp.clip(jnp.sqrt(area * ratio) * W, 2.0, float(W))
    ch = jnp.clip(jnp.sqrt(area / ratio) * H, 2.0, float(H))
    x0 = jax.random.uniform(k3, (B,)) * (W - cw)
    y0 = jax.random.uniform(k4, (B,)) * (H - ch)
    hflip = jax.random.uniform(k5, (B,)) < 0.5
    vflip = jax.random.uniform(k6, (B,)) < 0.5

    # Interpolation matrices (bf16 operands for the MXU; flips folded in).
    # TODO(synk): these could be built in-kernel from scalar-prefetched
    # (y0, ch, x0, cw, flips) to remove their HBM traffic entirely.
    Wy = _interp_matrices(y0, ch, H, vflip, crop_size).astype(jnp.bfloat16)          # (B, crop, H)
    WxT = jnp.swapaxes(_interp_matrices(x0, cw, W, hflip, crop_size), 1, 2
                       ).astype(jnp.bfloat16)                                        # (B, W, crop)

    mean_rows = jnp.repeat(jnp.asarray(mean, jnp.float32), crop_size)[:, None]       # (C*crop, 1)
    istd_rows = jnp.repeat(1.0 / jnp.asarray(std, jnp.float32), crop_size)[:, None]  # (C*crop, 1)

    # Explicit VMEM budget so larger blocks still keep 2/3-deep buffering on
    # v7x's 64 MiB parts (and don't over-ask on v5e/v6e).
    elem = jnp.dtype(x.dtype).itemsize
    x_block = C * H * W * elem
    other_blocks = crop_size * H * 2 + W * crop_size * 2 + 2 * C * crop_size * 4
    out_block = C * crop_size * crop_size * 4
    need = 3 * x_block + 2 * (other_blocks + out_block)
    vmem_limit = int(min(64 * 1024 * 1024, max(32 * 1024 * 1024, 2 * need)))

    # Deeper buffering on the image input only pays off when there are enough
    # grid steps to look ahead into.
    x_spec_kwargs = {}
    if B >= 3:
        x_spec_kwargs["pipeline_mode"] = pl.Buffered(3)
    x_spec = pl.BlockSpec((1, C, H, W), lambda b: (b, 0, 0, 0), **x_spec_kwargs)

    kernel = _make_aug_kernel(C, crop_size)
    out_flat = pl.pallas_call(
        kernel,
        out_shape=jax.ShapeDtypeStruct((B, C * crop_size, crop_size), jnp.float32),
        grid=(B,),
        in_specs=[
            x_spec,                                                   # native-dtype image
            pl.BlockSpec((1, crop_size, H), lambda b: (b, 0, 0)),     # Wy   (bf16)
            pl.BlockSpec((1, W, crop_size), lambda b: (b, 0, 0)),     # Wx^T (bf16)
            # Block-invariant normalization constants (constant index map -> no re-DMA).
            pl.BlockSpec((C * crop_size, 1), lambda b: (0, 0)),
            pl.BlockSpec((C * crop_size, 1), lambda b: (0, 0)),
        ],
        out_specs=pl.BlockSpec((1, C * crop_size, crop_size), lambda b: (b, 0, 0)),
        compiler_params=pltpu.CompilerParams(
            dimension_semantics=("parallel",),     # keep >=2-wide parallel axis for v7x
            vmem_limit_bytes=vmem_limit,
        ),
    )(x, Wy, WxT, mean_rows, istd_rows)
    # Free row-major reshape back to NCHW.
    return out_flat.reshape(B, C, crop_size, crop_size)


if __name__ == "__main__":
    key = jax.random.PRNGKey(0)
    kx, kaug = jax.random.split(key)

    B, C, H, W = 2, 4, 16, 16
    crop_size = 8
    x = jax.random.uniform(kx, (B, C, H, W), dtype=jnp.float32)

    # Deterministic "params.mean" / "params.std" per channel.
    mean = jnp.linspace(0.4, 0.5, C).astype(jnp.float32)
    std = jnp.linspace(0.2, 0.3, C).astype(jnp.float32)

    out = linear_data_augmentation(x, mean, std, kaug, crop_size)
    out = jax.block_until_ready(out)
    assert out.shape == (B, C, crop_size, crop_size)
    assert bool(jnp.all(jnp.isfinite(out)))
    print("KERNEL_OK")
</pallas_src>

<mosaic_0001>
module attributes {stable_mosaic.version = 11 : i64} {
  func.func @kernel(%arg0: i32, %arg1: memref<1x4x16x16xf32, #tpu.memory_space<vmem>>, %arg2: memref<1x8x16xbf16, #tpu.memory_space<vmem>>, %arg3: memref<1x16x8xbf16, #tpu.memory_space<vmem>>, %arg4: memref<32x1xf32, #tpu.memory_space<vmem>>, %arg5: memref<32x1xf32, #tpu.memory_space<vmem>>, %arg6: memref<1x32x8xf32, #tpu.memory_space<vmem>>) attributes {dimension_semantics = [#tpu.dimension_semantics<parallel>], iteration_bounds = array<i64: 2>, scalar_prefetch = 0 : i64, scratch_operands = 0 : i64, tpu.core_type = #tpu.core_type<tc>, window_params = [{transform_indices = @transform_0, window_bounds = array<i64: 1, 4, 16, 16>}, {transform_indices = @transform_1, window_bounds = array<i64: 1, 8, 16>}, {transform_indices = @transform_2, window_bounds = array<i64: 1, 16, 8>}, {pipeline_mode = #tpu.pipeline_mode<synchronous>, transform_indices = @transform_3, window_bounds = array<i64: 32, 1>}, {pipeline_mode = #tpu.pipeline_mode<synchronous>, transform_indices = @transform_4, window_bounds = array<i64: 32, 1>}, {transform_indices = @transform_5, window_bounds = array<i64: 1, 32, 8>}]} {
    %c0 = arith.constant 0 : index
    %c0_0 = arith.constant 0 : index
    %c0_1 = arith.constant 0 : index
    %0 = vector.load %arg2[%c0, %c0_0, %c0_1] : memref<1x8x16xbf16, #tpu.memory_space<vmem>>, vector<1x8x16xbf16>
    %1 = vector.shape_cast %0 : vector<1x8x16xbf16> to vector<8x16xbf16>
    %c0_2 = arith.constant 0 : index
    %c0_3 = arith.constant 0 : index
    %c0_4 = arith.constant 0 : index
    %2 = vector.load %arg3[%c0_2, %c0_3, %c0_4] : memref<1x16x8xbf16, #tpu.memory_space<vmem>>, vector<1x16x8xbf16>
    %3 = vector.shape_cast %2 : vector<1x16x8xbf16> to vector<16x8xbf16>
    %c0_5 = arith.constant 0 : index
    %c0_6 = arith.constant 0 : index
    %c0_7 = arith.constant 0 : index
    %c0_8 = arith.constant 0 : index
    %4 = vector.load %arg1[%c0_5, %c0_6, %c0_7, %c0_8] : memref<1x4x16x16xf32, #tpu.memory_space<vmem>>, vector<1x1x16x16xf32>
    %5 = vector.shape_cast %4 : vector<1x1x16x16xf32> to vector<16x16xf32>
    %6 = arith.truncf %5 : vector<16x16xf32> to vector<16x16xbf16>
    %cst = arith.constant dense<0.000000e+00> : vector<8x16xf32>
    %7 = tpu.matmul %1, %6, %cst {dimension_numbers = #tpu.dot_dimension_numbers<[1], [0], [0], [1], [0, 0, 1, 1], [], []>} : vector<8x16xbf16>, vector<16x16xbf16>, vector<8x16xf32> -> vector<8x16xf32>
    %c0_9 = arith.constant 0 : index
    %c1 = arith.constant 1 : index
    %c0_10 = arith.constant 0 : index
    %c0_11 = arith.constant 0 : index
    %8 = vector.load %arg1[%c0_9, %c1, %c0_10, %c0_11] : memref<1x4x16x16xf32, #tpu.memory_space<vmem>>, vector<1x1x16x16xf32>
    %9 = vector.shape_cast %8 : vector<1x1x16x16xf32> to vector<16x16xf32>
    %10 = arith.truncf %9 : vector<16x16xf32> to vector<16x16xbf16>
    %cst_12 = arith.constant dense<0.000000e+00> : vector<8x16xf32>
    %11 = tpu.matmul %1, %10, %cst_12 {dimension_numbers = #tpu.dot_dimension_numbers<[1], [0], [0], [1], [0, 0, 1, 1], [], []>} : vector<8x16xbf16>, vector<16x16xbf16>, vector<8x16xf32> -> vector<8x16xf32>
    %c0_13 = arith.constant 0 : index
    %c2 = arith.constant 2 : index
    %c0_14 = arith.constant 0 : index
    %c0_15 = arith.constant 0 : index
    %12 = vector.load %arg1[%c0_13, %c2, %c0_14, %c0_15] : memref<1x4x16x16xf32, #tpu.memory_space<vmem>>, vector<1x1x16x16xf32>
    %13 = vector.shape_cast %12 : vector<1x1x16x16xf32> to vector<16x16xf32>
    %14 = arith.truncf %13 : vector<16x16xf32> to vector<16x16xbf16>
    %cst_16 = arith.constant dense<0.000000e+00> : vector<8x16xf32>
    %15 = tpu.matmul %1, %14, %cst_16 {dimension_numbers = #tpu.dot_dimension_numbers<[1], [0], [0], [1], [0, 0, 1, 1], [], []>} : vector<8x16xbf16>, vector<16x16xbf16>, vector<8x16xf32> -> vector<8x16xf32>
    %c0_17 = arith.constant 0 : index
    %c3 = arith.constant 3 : index
    %c0_18 = arith.constant 0 : index
    %c0_19 = arith.constant 0 : index
    %16 = vector.load %arg1[%c0_17, %c3, %c0_18, %c0_19] : memref<1x4x16x16xf32, #tpu.memory_space<vmem>>, vector<1x1x16x16xf32>
    %17 = vector.shape_cast %16 : vector<1x1x16x16xf32> to vector<16x16xf32>
    %18 = arith.truncf %17 : vector<16x16xf32> to vector<16x16xbf16>
    %cst_20 = arith.constant dense<0.000000e+00> : vector<8x16xf32>
    %19 = tpu.matmul %1, %18, %cst_20 {dimension_numbers = #tpu.dot_dimension_numbers<[1], [0], [0], [1], [0, 0, 1, 1], [], []>} : vector<8x16xbf16>, vector<16x16xbf16>, vector<8x16xf32> -> vector<8x16xf32>
    %20 = tpu.concatenate %7, %11, %15, %19 in 0 : vector<8x16xf32>, vector<8x16xf32>, vector<8x16xf32>, vector<8x16xf32> -> vector<32x16xf32>
    %21 = arith.truncf %20 : vector<32x16xf32> to vector<32x16xbf16>
    %cst_21 = arith.constant dense<0.000000e+00> : vector<32x8xf32>
    %22 = tpu.matmul %21, %3, %cst_21 {dimension_numbers = #tpu.dot_dimension_numbers<[1], [0], [0], [1], [0, 0, 1, 1], [], []>} : vector<32x16xbf16>, vector<16x8xbf16>, vector<32x8xf32> -> vector<32x8xf32>
    %c0_22 = arith.constant 0 : index
    %c0_23 = arith.constant 0 : index
    %23 = vector.load %arg4[%c0_22, %c0_23] : memref<32x1xf32, #tpu.memory_space<vmem>>, vector<32x1xf32>
    %24 = vector.broadcast %23 : vector<32x1xf32> to vector<32x8xf32>
    %25 = arith.subf %22, %24 : vector<32x8xf32>
    %c0_24 = arith.constant 0 : index
    %c0_25 = arith.constant 0 : index
    %26 = vector.load %arg5[%c0_24, %c0_25] : memref<32x1xf32, #tpu.memory_space<vmem>>, vector<32x1xf32>
    %27 = vector.broadcast %26 : vector<32x1xf32> to vector<32x8xf32>
    %28 = arith.mulf %25, %27 : vector<32x8xf32>
    %c0_26 = arith.constant 0 : index
    %c0_27 = arith.constant 0 : index
    %c0_28 = arith.constant 0 : index
    %29 = vector.load %arg6[%c0_26, %c0_27, %c0_28] : memref<1x32x8xf32, #tpu.memory_space<vmem>>, vector<1x32x8xf32>
    %30 = vector.shape_cast %29 : vector<1x32x8xf32> to vector<32x8xf32>
    %31 = vector.shape_cast %28 : vector<32x8xf32> to vector<1x32x8xf32>
    tpu.vector_store %arg6[%c0_26, %c0_27, %c0_28], %31 {strides = array<i32>} : memref<1x32x8xf32, #tpu.memory_space<vmem>>, vector<1x32x8xf32>,
    return
  }
  func.func @transform_0(%arg0: i32) -> (i32, i32, i32, i32) {
    %c0_i32 = arith.constant 0 : i32
    %c0_i32_0 = arith.constant 0 : i32
    %c0_i32_1 = arith.constant 0 : i32
    %c0_i32_2 = arith.constant 0 : i32
    return %arg0, %c0_i32, %c0_i32_0, %c0_i32_1 : i32, i32, i32, i32
  }
  func.func @transform_1(%arg0: i32) -> (i32, i32, i32) {
    %c0_i32 = arith.constant 0 : i32
    %c0_i32_0 = arith.constant 0 : i32
    %c0_i32_1 = arith.constant 0 : i32
    return %arg0, %c0_i32, %c0_i32_0 : i32, i32, i32
  }
  func.func @transform_2(%arg0: i32) -> (i32, i32, i32) {
    %c0_i32 = arith.constant 0 : i32
    %c0_i32_0 = arith.constant 0 : i32
    %c0_i32_1 = arith.constant 0 : i32
    return %arg0, %c0_i32, %c0_i32_0 : i32, i32, i32
  }
  func.func @transform_3(%arg0: i32) -> (i32, i32) {
    %c0_i32 = arith.constant 0 : i32
    %c0_i32_0 = arith.constant 0 : i32
    %c0_i32_1 = arith.constant 0 : i32
    return %c0_i32, %c0_i32_0 : i32, i32
  }
  func.func @transform_4(%arg0: i32) -> (i32, i32) {
    %c0_i32 = arith.constant 0 : i32
    %c0_i32_0 = arith.constant 0 : i32
    %c0_i32_1 = arith.constant 0 : i32
    return %c0_i32, %c0_i32_0 : i32, i32
  }
  func.func @transform_5(%arg0: i32) -> (i32, i32, i32) {
    %c0_i32 = arith.constant 0 : i32
    %c0_i32_0 = arith.constant 0 : i32
    %c0_i32_1 = arith.constant 0 : i32
    return %arg0, %c0_i32, %c0_i32_0 : i32, i32, i32
  }
}

</mosaic_0001>

<bundles_post_ra>
// kernel: tpu_custom_call.1
= control target key start
LH: loop header
LB: loop body
LE: loop exit
PB: predicated region body
PF: predicated region fallthrough
CT: control target
= control target key end

     0   :  { %10 = vsyncpa [#allocation3], 0  ;;  %s1054_s0 = inlined_call_operand.hbm [shape: f32[2,4,16,16], index: 0, kind: input, shape index: {}]   ;;  %s1055_s1 = inlined_call_operand.vmem [shape: bf16[2,8,16], index: 1, kind: input, shape index: {}]   ;;  %s1056_s2 = inlined_call_operand.vmem [shape: bf16[2,16,8], index: 2, kind: input, shape index: {}]   ;;  %s1057_s3 = inlined_call_operand.vmem [shape: f32[32,1], index: 3, kind: input, shape index: {}]   ;;  %s1058_s4 = inlined_call_operand.vmem [shape: f32[32,1], index: 4, kind: input, shape index: {}]   ;;  %s1059_s5 = inlined_call_operand.vmem [shape: f32[2,32,8], index: 5, kind: output, shape index: {}]  }
   0x1   :  { %12 = vsyncpa [#allocation3 + $0x1], 0  ;;  %s901_s18 = smov 0   ;;  %s903_s19 = smov 0  }
   0x2   :  { %s905_s20 = smov 0   ;;  %s907_s21 = smov 0  }
   0x3 LB: > { %s920_s22 = sadd.s32 4294967295, %s863_s21   ;;  %s923_s23 = sadd.s32 1, %s863_s21   ;;  %s863_s21 = sphi %s907_s21, %s1066_s21   ;;  %s859_s20 = sphi %s905_s20, %s1065_s20   ;;  %s855_s19 = sphi %s903_s19, %s1064_s19   ;;  %s851_s18 = sphi %s901_s18, %s1063_s18  }
   0x4   : > { %s22_s24 = ssub.s32 %s863_s21, %s923_s23  ;;  %s25_s25 = sadd.s32 1, %s859_s20 }
   0x5   : > { %p23_p0 = scmp.eq.s32.totalorder %s22_s24, 0  ;;  %p32_p1 = scmp.ne.s32.totalorder %s859_s20, %s855_s19 }
   0x6   : > { %p33_p2 = scmp.eq.s32.totalorder %s863_s21, 0  ;;  %p38_p3 = scmp.ne.s32.totalorder %s855_s19, %s851_s18 }
   0x7   : > { %s933_s26 = scalar_select %p23_p0, %s859_s20, %s25_s25  }
   0x8   : > { %p34_p4 = por %p33_p2, %p32_p1  ;;  %p39_p5 = scmp.eq.s32.totalorder %s920_s22, 0 }
   0x9   : > { %p758_p6 = scmp.lt.s32.totalorder %s863_s21, 2  ;;  %s188_s28 = sand.u32 1, %s859_s20  }
   0xa   : > { %p937_p7 = por %p39_p5, %p38_p3  ;;  %s683_s29 = sshll.u32 %s188_s28, 6 }
   0xb   : > { %s708_s30 = sshll.u32 %s863_s21, 10  ;;  %s192_s9 = scalar_lea.vmem [#allocation2], %s683_s29 }
   0xc   : > { %s946_s8 = scalar_lea.hbm %s1054_s0, %s708_s30  ;;  %s199_s10 = sshll.u32 %s192_s9, 4  ;;  %s948_s10 = int_to_ptr.vmem [resolvable:$true] %s199_s10 }
   0xd   : > { %p950_p8 = pnand %p758_p6, %p34_p4  ;;  %s955_s12 = scalar_lea.sflag [#allocation3], %s188_s28 }
   0xe   : > { %s799_s13 = scalar_lea.hbm %s946_s8, 1024  ;;  %s804_s16 = scalar_lea.hbm %s1054_s0, 2048 }
   0xf   : > { %p800_p10 = scmp.ne.s32.totalorder %s946_s8, %s799_s13  ;;  %p801_p11 = pneg %p950_p8 }
  0x10   : > { %p805_p0 = scmp.lt.u32.totalorder %s946_s8, %s1054_s0  ;;  %p806_p1 = scmp.lt.u32.totalorder %s804_s16, %s799_s13 }
  0x11   : > { %p802_p12 = pnand %p801_p11, %p800_p10  ;;  %p808_p3 = scmp.lt.u32.totalorder %s799_s13, %s946_s8 }
  0x12   : > { %p807_p2 = por %p806_p1, %p805_p0 }
  0x13   : > { %p803_p13 = pneg %p802_p12 }
  0x14   : > { %p809_p4 = por %p808_p3, %p807_p2 }
  0x16   : > { %p810_p5 = pnand %p809_p4, %p803_p13 }
  0x18   : > { %813 = shalt.err (!%p810_p5)
}
  0x19   : > { %s814_s24 = scalar_lea.vmem %s948_s10, 1024  ;;  %s865_s25 = smov [#allocation2]  }
  0x1a   : > { %p815_p6 = scmp.ne.s32.totalorder %s948_s10, %s814_s24  ;;  %s819_s28 = sshll.u32 %s865_s25, 4  ;;  %s820_s28 = int_to_ptr.vmem [resolvable:$false] %s819_s28 }
  0x1b   : > { %s821_s29 = scalar_lea.vmem %s820_s28, 2048  ;;  %p822_p9 = scmp.lt.s32.totalorder %s948_s10, %s820_s28 }
  0x1c   : > { %p817_p10 = pnand %p815_p6, %p801_p11  ;;  %p823_p0 = scmp.lt.s32.totalorder %s821_s29, %s814_s24 }
  0x1e   : > { %p818_p12 = pneg %p817_p10  ;;  %p824_p1 = por %p823_p0, %p822_p9 }
  0x20   : > { %p825_p2 = pnand %p824_p1, %p818_p12 }
  0x22   : > { %828 = shalt.err (!%p825_p2)
}
  0x23   : > { %s866_s30 = smov 128   ;;  %s867_s6 = smov 8  }
  0x24   : > { %757 = dma.hbm_to_vmem [thread:$0]  (!%p950_p8), %s946_s8, 1024, %s948_s10, %s955_s12, %s866_s30, %s866_s30, %s867_s6  }
  0x25   : > { %p222_p11 = scmp.lt.s32.totalorder %s863_s21, 3  ;;  %p1062_p13 = scmp.ge.s32.totalorder %s863_s21, 1 }
  0x27   : > { %p223_p3 = pnand %p1062_p13, %p222_p11 }
  0x28   : > { %s228_s7 = sand.u32 (!%p223_p3), 1, %s855_s19  }
  0x29   : > { %226 = sbr.rel (%p223_p3) target bundleno = 498 (0x1f2), region = 40  ;;  %s687_s9 = sshll.u32 (!%p223_p3), %s228_s7, 6 }
  0x2a   : > { %s229_s13 = scalar_lea.sflag (!%p223_p3), [#allocation3], %s228_s7  ;;  %s232_s14 = scalar_lea.vmem (!%p223_p3), [#allocation2], %s687_s9 }
  0x30   : > { %846 = dma.done.wait (%p937_p7), %s229_s13, 1024  }
  0x31   : > { %848 = vsyncadd (%p937_p7), %s229_s13, 4294966272  ;;  %p268_p9 = scmp.lt.s32.totalorder %s920_s22, 1  ;;  %v868_v0 = vmov 0.0   ;;  %vm869_vm0 = vmmov 0   ;;  %v286_v1 = vld [vmem:[%s232_s14] sm:$0xff]  ;;  %v287_v2 = vld [vmem:[%s232_s14 + $0x8] sm:$0xff] }
  0x32   : > { %722 = vmatprep.subr.bf16.mxu0 %v868_v0  ;;  %728 = vmatprep.subr.bf16.mxu1 %v868_v0  ;;  %v694_v3 = vld [vmem:[%s232_s14 + $0x10] sm:$0xff]  ;;  %v288_v4 = vpack.c.bf16 %v287_v2, %v286_v1  ;;  %v695_v5 = vld [vmem:[%s232_s14 + $0x18] sm:$0xff]  ;;  %v697_v6 = vld [vmem:[%s232_s14 + $0x20] sm:$0xff]  ;;  %vm289_vm1 = vcmask 130048   ;;  %v870_v17 = vmov 0   ;;  %vm584_vm2 = vcmask 64512  }
  0x33   : > { %724 = vmatprep.mubr.msk.bf16.mxu0 %vm869_vm0, %v868_v0  ;;  %730 = vmatprep.mubr.msk.bf16.mxu1 %vm869_vm0, %v868_v0  ;;  %s1068_s22 = smov (!%p268_p9, %s920_s22), 1  ;;  %v336_v7 = vpack.c.bf16 %v695_v5, %v694_v3  ;;  %v698_v8 = vld [vmem:[%s232_s14 + $0x28] sm:$0xff]  ;;  %v700_v9 = vld [vmem:[%s232_s14 + $0x30] sm:$0xff]  ;;  %v701_v10 = vld [vmem:[%s232_s14 + $0x38] sm:$0xff] }
  0x34   : > { %s688_s21 = sshll.u32 %s1068_s22, 2  ;;  %723 = vmatpush3.bf16.msra.mxu0 %v288_v4  ;;  %v380_v12 = vpack.c.bf16 %v698_v8, %v697_v6  ;;  %v424_v13 = vpack.c.bf16 %v701_v10, %v700_v9  ;;  %s709_s11 = sshll.u32 %s1068_s22, 3  ;;  %v530_v15 = vld [vmem:[%s1057_s3 + $0x10] sm:$0xff]  ;;  %v528_v16 = vld [vmem:[%s1057_s3] sm:$0xff]  ;;  %797 = vset.pattern.permute.xlu1 %v870_v17  ;;  %v531_v18 = vld [vmem:[%s1057_s3 + $0x18] sm:$0xff] }
  0x35   : > { %s271_s10 = scalar_lea.vmem %s1055_s1, %s688_s21  ;;  %729 = vmatpush3.bf16.msra.mxu1 %v336_v7  ;;  %734 = vmatprep.subr.bf16.mxu0 %v868_v0  ;;  %s276_s16 = scalar_lea.vmem %s1056_s2, %s709_s11  ;;  %v529_v19 = vld [vmem:[%s1057_s3 + $0x8] sm:$0xff]  ;;  %v556_v21 = vld [vmem:[%s1058_s4] sm:$0xff]  ;;  %v559_v22 = vld [vmem:[%s1058_s4 + $0x18] sm:$0xff] }
  0x36   : > { %v283_v11 = vld [vmem:[%s271_s10] sm:$0xf]  ;;  %740 = vmatprep.subr.bf16.mxu1 %v868_v0  ;;  %796 = vset.pattern.permute.xlu0 %v870_v17  ;;  %v557_v20 = vld [vmem:[%s1058_s4 + $0x8] sm:$0xff]  ;;  %v558_v23 = vld [vmem:[%s1058_s4 + $0x10] sm:$0xff]  ;;  %s710_s11 = sshll.u32 %s1068_s22, 5 }
  0x37   : > { %725 = vmatmul.mubr.msk.bf16.vlgmr.msra.gmra.mrb[0].mxu0 %vm289_vm1, %v283_v11  ;;  %v798_v14 = vld [vmem:[%s276_s16] sm:$0xff]   ;;  %544 = vperm.xlu1 %797, %v530_v15   ;;  %s281_s16 = scalar_lea.vmem %s1059_s5, %s710_s11 }
  0x38   : > { %731 = vmatmul.mubr.msk.bf16.vlgmr.msra.gmra.mrb[0].mxu1 %vm289_vm1, %v283_v11  ;;  %735 = vmatpush3.bf16.msra.mxu0 %v380_v12 }
  0x39   : > { %741 = vmatpush3.bf16.msra.mxu1 %v424_v13  ;;  %736 = vmatprep.mubr.msk.bf16.mxu0 %vm869_vm0, %v868_v0 }
  0x3a   : > { %742 = vmatprep.mubr.msk.bf16.mxu1 %vm869_vm0, %v868_v0  ;;  %746 = vmatprep.subr.bf16.mxu0 %v798_v14 }
  0x3b   : > { %534 = vperm.xlu0 %796, %v528_v16   ;;  %549 = vperm.xlu1 %797, %v531_v18  }
  0x3f   : > { %737 = vmatmul.mubr.msk.bf16.vlgmr.msra.gmra.mrb[4].mxu0 %vm289_vm1, %v283_v11  ;;  %539 = vperm.xlu0 %796, %v529_v19  }
  0x40   : > { %743 = vmatmul.mubr.msk.bf16.vlgmr.msra.gmra.mrb[4].mxu1 %vm289_vm1, %v283_v11  ;;  %747 = vmatpush3.bf16.msra.mxu0 %v798_v14 }
  0x41   : > { %567 = vperm.xlu1 %797, %v557_v20  }
  0x43   : > { %562 = vperm.xlu0 %796, %v556_v21  }
  0x45   : > { %577 = vperm.xlu1 %797, %v559_v22  }
  0x47   : > { %572 = vperm.xlu0 %796, %v558_v23  }
  0xb6   : > { %v545_v43 = vpop.permute.xlu1 %544 }
  0xba   : > { %v535_v42 = vpop.permute.xlu0 %534  ;;  %v550_v45 = vpop.permute.xlu1 %549 }
  0xbe   : > { %v540_v44 = vpop.permute.xlu0 %539 }
  0xc0   : > { %v568_v47 = vpop.permute.xlu1 %567 }
  0xc2   : > { %v563_v46 = vpop.permute.xlu0 %562 }
  0xc4   : > { %v578_v57 = vpop.permute.xlu1 %577 }
  0xc6   : > { %v573_v51 = vpop.permute.xlu0 %572 }
 0x10a   : > { %v327_v24 = vpop.f32.mrb[0].mxu0 }
 0x10b   : > { %v371_v25 = vpop.f32.mrb[0].mxu1  ;;  %v726_v26 = vpop.f32.mrb[1].mxu0 }
 0x10c   : > { %v465_v27 = vpack.c.bf16 %v371_v25, %v327_v24  ;;  %v732_v28 = vpop.f32.mrb[1].mxu1  ;;  %v330_v29 = vpop.f32.mrb[2].mxu0 }
 0x10d   : > { %v374_v30 = vpop.f32.mrb[2].mxu1  ;;  %v727_v31 = vpop.f32.mrb[3].mxu0 }
 0x10e   : > { %v733_v32 = vpop.f32.mrb[3].mxu1  ;;  %748 = vmatprep.mubr.msk.bf16.mxu0 %vm289_vm1, %v465_v27 }
 0x112   : > { %v415_v33 = vpop.f32.mrb[4].mxu0 }
 0x113   : > { %v459_v34 = vpop.f32.mrb[4].mxu1  ;;  %v738_v35 = vpop.f32.mrb[5].mxu0 }
 0x114   : > { %v466_v36 = vpack.c.bf16 %v459_v34, %v415_v33  ;;  %v744_v37 = vpop.f32.mrb[5].mxu1  ;;  %v418_v38 = vpop.f32.mrb[6].mxu0 }
 0x115   : > { %v462_v39 = vpop.f32.mrb[6].mxu1  ;;  %v739_v40 = vpop.f32.mrb[7].mxu0 }
 0x116   : > { %v745_v41 = vpop.f32.mrb[7].mxu1  ;;  %749 = vmatmul.mubr.msk.bf16.vlgmr.msra.gmra.mrb[8].mxu0 %vm289_vm1, %v466_v36 }
 0x1e9   : > { %v750_v48 = vpop.f32.mrb[8].mxu0 }
 0x1ea   : > { %v554_v49 = vsub.f32 %v750_v48, %v545_v43  ;;  %v513_v50 = vpop.f32.mrb[9].mxu0 }
 0x1eb   : > { %v552_v52 = vsub.f32 %v513_v50, %v535_v42  ;;  %v751_v53 = vpop.f32.mrb[10].mxu0 }
 0x1ec   : > { %v582_v54 = vmul.f32 %v573_v51, %v554_v49  ;;  %v555_v55 = vsub.f32 %v751_v53, %v550_v45  ;;  %v516_v56 = vpop.f32.mrb[11].mxu0 }
 0x1ed   : > { %v580_v58 = vmul.f32 %v563_v46, %v552_v52  ;;  %v553_v59 = vsub.f32 %v516_v56, %v540_v44 }
 0x1ee   : > { %587 = vst.msk [vmem:[%s281_s16 + $0x10] sm:$0xff] %vm584_vm2, %v582_v54  ;;  %v583_v60 = vmul.f32 %v578_v57, %v555_v55 }
 0x1ef   : > { %585 = vst.msk [vmem:[%s281_s16] sm:$0xff] %vm584_vm2, %v580_v58  ;;  %v581_v61 = vmul.f32 %v568_v47, %v553_v59 }
 0x1f0   : > { %588 = vst.msk [vmem:[%s281_s16 + $0x18] sm:$0xff] %vm584_vm2, %v583_v60 }
 0x1f1   : > { %586 = vst.msk [vmem:[%s281_s16 + $0x8] sm:$0xff] %vm584_vm2, %v581_v61 }
 0x1f2 PF: > { %p15_p7 = scmp.ge.s32.totalorder %s923_s23, 4   ;;  %s1063_s18 = smov %s855_s19 }
 0x1f3   : > { %s1064_s19 = smov %s859_s20  ;;  %s1065_s20 = smov %s933_s26 }
 0x1f4   : > { %s1066_s21 = smov %s923_s23  ;;  %17 = sbr.rel (!%p15_p7) target bundleno = 3 (0x3), region = 89 }
 0x1fb   :  { %610 = vsyncpa [#allocation3], 1 }
 0x1fc   :  { %612 = vsyncpa [#allocation3 + $0x1], 1 }

</bundles_post_ra>
